<compile_context>
chip_gen: v5e
topology: v5e:2x2
jax: 0.10.0
libtpu: 0.0.40
codegen_flags: <defaults>
</compile_context>

<pallas_src>
import math

import jax
import jax.numpy as jnp
from jax.experimental import pallas as pl
from jax.experimental.pallas import tpu as pltpu

# ---------------- model hyper-parameters (small, consistent with the module) --
D_MODEL = 32
NHEAD = 4
DIM_FF = 64
HEAD_DIM = D_MODEL // NHEAD
EPS = 1e-5
SEQ = 8
BATCH = 2

# ---------------- packed parameter-slab layout (lane width = 4*D = 128) -------
SLAB_LANES = 4 * D_MODEL                      # 128
ROW_WVO = 0                                   # rows [0, D)        : Wvo (D, 4D)
ROW_QK_W1 = D_MODEL                           # rows [D, 2D)       : [Wqk (D,2D) | W1 (D,FF)]
ROW_W2 = 2 * D_MODEL                          # rows [2D, 2D+FF)   : W2 (FF, D) in lanes [0,D)
ROW_BIAS = 2 * D_MODEL + DIM_FF               # 8-row bias block (3 rows used)
ROW_MASK = ROW_BIAS + 8                       # rows [ROW_MASK, ROW_MASK+N) : additive mask


def _layer_norm(x, w, b):
    # PyTorch LayerNorm (biased variance).  var = E[x^2] - mean^2 so the two
    # cross-lane reductions are independent and can issue back-to-back.
    mu = jnp.mean(x, axis=-1, keepdims=True)
    ms = jnp.mean(x * x, axis=-1, keepdims=True)
    var = ms - mu * mu
    return (x - mu) * jax.lax.rsqrt(var + EPS) * w + b


def encoder_layer_kernel(x_ref, w_ref, o_ref):
    """x_ref: (N, D) tokens (row r = (s*B + b));  w_ref: packed (R, 128) slab;
    o_ref: (N, D) output."""
    n = x_ref.shape[0]
    x = x_ref[...].astype(jnp.float32)                                     # (N, D)

    # ---- carve the packed parameter slab (static slices) ---------------------
    wvo = w_ref[ROW_WVO:ROW_WVO + D_MODEL, :]                              # (D, 4D)  Wv_h@Wo_h per head
    wqk = w_ref[ROW_QK_W1:ROW_QK_W1 + D_MODEL, 0:2 * D_MODEL]              # (D, 2D)  [Wq*scale | Wk]
    w1 = w_ref[ROW_QK_W1:ROW_QK_W1 + D_MODEL, 2 * D_MODEL:2 * D_MODEL + DIM_FF]   # (D, FF)
    w2 = w_ref[ROW_W2:ROW_W2 + DIM_FF, 0:D_MODEL]                          # (FF, D)
    bias_blk = w_ref[ROW_BIAS:ROW_BIAS + 8, :]                             # (8, 128) — one vreg
    b_qk = bias_blk[0:1, 0:2 * D_MODEL]                                    # (1, 2D)
    b1 = bias_blk[0:1, 2 * D_MODEL:2 * D_MODEL + DIM_FF]                   # (1, FF)
    bo = bias_blk[1:2, 0:D_MODEL]                                          # (1, D) out_proj_b + bv@Wo
    b2 = bias_blk[1:2, D_MODEL:2 * D_MODEL]                                # (1, D)
    ln1_w = bias_blk[1:2, 2 * D_MODEL:3 * D_MODEL]                         # (1, D)
    ln1_b = bias_blk[1:2, 3 * D_MODEL:4 * D_MODEL]                         # (1, D)
    ln2_w = bias_blk[2:3, 0:D_MODEL]                                       # (1, D)
    ln2_b = bias_blk[2:3, D_MODEL:2 * D_MODEL]                             # (1, D)
    mask_bias = w_ref[ROW_MASK:ROW_MASK + n, 0:n]                          # (N, N)  0 / -1e30

    # ---- self-attention block on norm1(x) -------------------------------------
    xn = _layer_norm(x, ln1_w, ln1_b)                                      # (N, D)
    qk = jnp.dot(xn, wqk, preferred_element_type=jnp.float32) + b_qk       # (N, 2D) q pre-scaled
    vo = jnp.dot(xn, wvo, preferred_element_type=jnp.float32)              # (N, 4D) Wo folded in

    head_ctx = []
    for h in range(NHEAD):                                                 # static unroll, NHEAD small
        lo, hi = h * HEAD_DIM, (h + 1) * HEAD_DIM
        # scores = q_h @ k_h^T  (transpose via dot_general contracting dims)
        s = jax.lax.dot_general(
            qk[:, lo:hi], qk[:, D_MODEL + lo:D_MODEL + hi],
            dimension_numbers=(((1,), (1,)), ((), ())),
            preferred_element_type=jnp.float32)                            # (N, N)
        s = s + mask_bias                                                  # same-batch additive mask
        s = s - jnp.max(s, axis=-1, keepdims=True)
        p = jnp.exp(s)
        l = jnp.sum(p, axis=-1, keepdims=True)
        inv_l = pl.reciprocal(l, approx=True)                              # EUP slot
        inv_l = inv_l * (2.0 - l * inv_l)                                  # one Newton step -> ~f32 exact
        ctx = jnp.dot(p, vo[:, h * D_MODEL:(h + 1) * D_MODEL],
                      preferred_element_type=jnp.float32)                  # (N, D), unnormalized
        head_ctx.append(ctx * inv_l)                                       # normalize after the matmul

    # balanced pairwise reduction (no NHEAD-deep dependent add chain)
    while len(head_ctx) > 1:
        nxt = [a + b for a, b in zip(head_ctx[0::2], head_ctx[1::2])]
        if len(head_ctx) % 2:
            nxt.append(head_ctx[-1])
        head_ctx = nxt
    attn = head_ctx[0] + bo
    # TODO(synk): dropout1 / dropout / dropout2 are identity (inference mode).

    # residual + norm1 (post-norm, as written in the module)
    x1 = _layer_norm(x + attn, ln1_w, ln1_b)

    # ---- feed-forward block ----------------------------------------------------
    h1 = jnp.dot(x1, w1, preferred_element_type=jnp.float32) + b1
    h1 = jnp.maximum(h1, 0.0)                                              # relu (module default)
    ff = jnp.dot(h1, w2, preferred_element_type=jnp.float32) + b2

    # residual + norm2; direct (N, D) store (tiny output, no lane relayout)
    y = _layer_norm(x1 + ff, ln2_w, ln2_b)
    o_ref[...] = y.astype(o_ref.dtype)


def transformer_encoder_layer(src, slab):
    """src: (S, B, D) float32 (PyTorch batch_first=False layout).
    slab: packed parameter slab from pack_params (one lane-dense DMA)."""
    S, B, D = src.shape
    n = S * B
    x2d = src.reshape(n, D)                       # contiguous (free) reshape, no transposes

    vmem = pl.BlockSpec(memory_space=pltpu.MemorySpace.VMEM)
    out = pl.pallas_call(
        encoder_layer_kernel,
        out_shape=jax.ShapeDtypeStruct((n, D), src.dtype),
        # single gridless invocation: 2 inputs, 2 DMAs, no per-step pipeline cost
        in_specs=[vmem, vmem],
        out_specs=vmem,
    )(x2d, slab)
    return out.reshape(S, B, D)                   # contiguous (free) reshape back


def make_params(key):
    """Deterministic synthetic parameters, PyTorch-native shapes."""
    ks = jax.random.split(key, 8)
    s = 0.05
    return dict(
        in_proj_w=jax.random.normal(ks[0], (3 * D_MODEL, D_MODEL), jnp.float32) * s,
        in_proj_b=jax.random.normal(ks[1], (3 * D_MODEL,), jnp.float32) * s,
        out_proj_w=jax.random.normal(ks[2], (D_MODEL, D_MODEL), jnp.float32) * s,
        out_proj_b=jax.random.normal(ks[3], (D_MODEL,), jnp.float32) * s,
        lin1_w=jax.random.normal(ks[4], (DIM_FF, D_MODEL), jnp.float32) * s,
        lin1_b=jax.random.normal(ks[5], (DIM_FF,), jnp.float32) * s,
        lin2_w=jax.random.normal(ks[6], (D_MODEL, DIM_FF), jnp.float32) * s,
        lin2_b=jax.random.normal(ks[7], (D_MODEL,), jnp.float32) * s,
        ln1_w=jnp.ones((D_MODEL,), jnp.float32),
        ln1_b=jnp.zeros((D_MODEL,), jnp.float32),
        ln2_w=jnp.ones((D_MODEL,), jnp.float32),
        ln2_b=jnp.zeros((D_MODEL,), jnp.float32),
    )


def pack_params(p, seq, batch):
    """One-time parameter prep: fold attention scale into Q, fold W_out into the
    value projection (and its bias contribution into the output bias), and pack
    everything — plus the same-batch additive mask — into ONE lane-dense slab."""
    D, FF, H, Dh = D_MODEL, DIM_FF, NHEAD, HEAD_DIM
    assert H * Dh == D and 2 * D + FF <= SLAB_LANES
    n = seq * batch
    assert n <= SLAB_LANES, "token count must fit the mask lane width"

    scale = 1.0 / math.sqrt(Dh)
    wq_t = p["in_proj_w"][0:D].T * scale
    bq = p["in_proj_b"][0:D] * scale
    wk_t = p["in_proj_w"][D:2 * D].T
    bk = p["in_proj_b"][D:2 * D]
    wv_t = p["in_proj_w"][2 * D:3 * D].T
    bv = p["in_proj_b"][2 * D:3 * D]
    wo_t = p["out_proj_w"].T

    # Fold the output projection into the value projection, per head:
    #   ctx_h @ Wo_h == P_h @ (xn @ (Wv_h Wo_h));  bv_h contributes bv@Wo to the
    #   output for any attention pattern (softmax rows sum to 1).
    wvo = jnp.concatenate(
        [wv_t[:, h * Dh:(h + 1) * Dh] @ wo_t[h * Dh:(h + 1) * Dh, :] for h in range(H)],
        axis=1)                                                   # (D, H*D) = (32, 128)
    bo_folded = p["out_proj_b"] + bv @ wo_t                       # (D,)

    wqk = jnp.concatenate([wq_t, wk_t], axis=1)                   # (D, 2D)
    bqk = jnp.concatenate([bq, bk])                               # (2D,)
    w1_t = p["lin1_w"].T                                          # (D, FF)
    w2_t = p["lin2_w"].T                                          # (FF, D)

    # Same-batch additive attention mask for the row-major (S*B, D) token layout.
    r = jnp.arange(n)
    same = (r[:, None] % batch) == (r[None, :] % batch)
    mask_bias = jnp.where(same, 0.0, -1e30).astype(jnp.float32)   # (n, n)

    rows = ROW_MASK + ((n + 7) // 8) * 8
    slab = jnp.zeros((rows, SLAB_LANES), jnp.float32)
    slab = slab.at[ROW_WVO:ROW_WVO + D, :].set(wvo)
    slab = slab.at[ROW_QK_W1:ROW_QK_W1 + D, 0:2 * D].set(wqk)
    slab = slab.at[ROW_QK_W1:ROW_QK_W1 + D, 2 * D:2 * D + FF].set(w1_t)
    slab = slab.at[ROW_W2:ROW_W2 + FF, 0:D].set(w2_t)
    slab = slab.at[ROW_BIAS, 0:2 * D].set(bqk)
    slab = slab.at[ROW_BIAS, 2 * D:2 * D + FF].set(p["lin1_b"])
    slab = slab.at[ROW_BIAS + 1, 0:D].set(bo_folded)
    slab = slab.at[ROW_BIAS + 1, D:2 * D].set(p["lin2_b"])
    slab = slab.at[ROW_BIAS + 1, 2 * D:3 * D].set(p["ln1_w"])
    slab = slab.at[ROW_BIAS + 1, 3 * D:4 * D].set(p["ln1_b"])
    slab = slab.at[ROW_BIAS + 2, 0:D].set(p["ln2_w"])
    slab = slab.at[ROW_BIAS + 2, D:2 * D].set(p["ln2_b"])
    slab = slab.at[ROW_MASK:ROW_MASK + n, 0:n].set(mask_bias)
    return slab


# ---------------------- pure-JAX reference (for verification) -----------------
def reference(src, p):
    """Straightforward implementation from the un-folded PyTorch-shaped params."""
    x = jnp.transpose(src, (1, 0, 2))              # (B, S, D)

    def ln(x, w, b):
        mu = jnp.mean(x, axis=-1, keepdims=True)
        var = jnp.mean((x - mu) ** 2, axis=-1, keepdims=True)
        return (x - mu) / jnp.sqrt(var + EPS) * w + b

    xn = ln(x, p["ln1_w"], p["ln1_b"])
    qkv = xn @ p["in_proj_w"].T + p["in_proj_b"]
    q, k, v = jnp.split(qkv, 3, axis=-1)
    B, S, _ = q.shape
    qh = q.reshape(B, S, NHEAD, HEAD_DIM).transpose(0, 2, 1, 3)
    kh = k.reshape(B, S, NHEAD, HEAD_DIM).transpose(0, 2, 1, 3)
    vh = v.reshape(B, S, NHEAD, HEAD_DIM).transpose(0, 2, 1, 3)
    s = jnp.einsum("bhqd,bhkd->bhqk", qh, kh) / math.sqrt(HEAD_DIM)
    pmat = jax.nn.softmax(s, axis=-1)
    o = jnp.einsum("bhqk,bhkd->bhqd", pmat, vh).transpose(0, 2, 1, 3).reshape(B, S, D_MODEL)
    attn = o @ p["out_proj_w"].T + p["out_proj_b"]
    x1 = ln(x + attn, p["ln1_w"], p["ln1_b"])
    ff = jnp.maximum(x1 @ p["lin1_w"].T + p["lin1_b"], 0.0) @ p["lin2_w"].T + p["lin2_b"]
    y = ln(x1 + ff, p["ln2_w"], p["ln2_b"])
    return jnp.transpose(y, (1, 0, 2))


if __name__ == "__main__":
    key = jax.random.PRNGKey(0)
    k_src, k_par = jax.random.split(key)
    src = jax.random.normal(k_src, (SEQ, BATCH, D_MODEL), jnp.float32)
    params = make_params(k_par)
    slab = pack_params(params, SEQ, BATCH)         # one-time prep, outside the kernel

    out = jax.block_until_ready(transformer_encoder_layer(src, slab))
    ref = jax.block_until_ready(reference(src, params))

    assert out.shape == (SEQ, BATCH, D_MODEL)
    max_diff = jnp.max(jnp.abs(out - ref))
    assert jnp.allclose(out, ref, atol=2e-4, rtol=2e-4), f"max abs diff {max_diff}"

    print("KERNEL_OK")
</pallas_src>

<mosaic_0001>
module attributes {stable_mosaic.version = 11 : i64} {
  func.func @encoder_layer_kernel(%arg0: memref<16x32xf32, #tpu.memory_space<vmem>>, %arg1: memref<152x128xf32, #tpu.memory_space<vmem>>, %arg2: memref<16x32xf32, #tpu.memory_space<vmem>>) attributes {dimension_semantics = [], scalar_prefetch = 0 : i64, scratch_operands = 0 : i64, tpu.core_type = #tpu.core_type<tc>} {
    %c0 = arith.constant 0 : index
    %c0_0 = arith.constant 0 : index
    %0 = vector.load %arg0[%c0, %c0_0] : memref<16x32xf32, #tpu.memory_space<vmem>>, vector<16x32xf32>
    %c0_1 = arith.constant 0 : index
    %c0_2 = arith.constant 0 : index
    %1 = vector.load %arg1[%c0_1, %c0_2] : memref<152x128xf32, #tpu.memory_space<vmem>>, vector<32x128xf32>
    %c32 = arith.constant 32 : index
    %c0_3 = arith.constant 0 : index
    %2 = vector.load %arg1[%c32, %c0_3] : memref<152x128xf32, #tpu.memory_space<vmem>>, vector<32x64xf32>
    %c32_4 = arith.constant 32 : index
    %c64 = arith.constant 64 : index
    %3 = vector.load %arg1[%c32_4, %c64] : memref<152x128xf32, #tpu.memory_space<vmem>>, vector<32x64xf32>
    %c64_5 = arith.constant 64 : index
    %c0_6 = arith.constant 0 : index
    %4 = vector.load %arg1[%c64_5, %c0_6] : memref<152x128xf32, #tpu.memory_space<vmem>>, vector<64x32xf32>
    %c128 = arith.constant 128 : index
    %c0_7 = arith.constant 0 : index
    %5 = vector.load %arg1[%c128, %c0_7] : memref<152x128xf32, #tpu.memory_space<vmem>>, vector<8x128xf32>
    %6 = vector.extract_strided_slice %5 {offsets = [0, 0], sizes = [1, 64], strides = [1, 1]} : vector<8x128xf32> to vector<1x64xf32>
    %7 = vector.extract_strided_slice %5 {offsets = [0, 64], sizes = [1, 64], strides = [1, 1]} : vector<8x128xf32> to vector<1x64xf32>
    %8 = vector.extract_strided_slice %5 {offsets = [1, 0], sizes = [1, 32], strides = [1, 1]} : vector<8x128xf32> to vector<1x32xf32>
    %9 = vector.extract_strided_slice %5 {offsets = [1, 32], sizes = [1, 32], strides = [1, 1]} : vector<8x128xf32> to vector<1x32xf32>
    %10 = vector.extract_strided_slice %5 {offsets = [1, 64], sizes = [1, 32], strides = [1, 1]} : vector<8x128xf32> to vector<1x32xf32>
    %11 = vector.extract_strided_slice %5 {offsets = [1, 96], sizes = [1, 32], strides = [1, 1]} : vector<8x128xf32> to vector<1x32xf32>
    %12 = vector.extract_strided_slice %5 {offsets = [2, 0], sizes = [1, 32], strides = [1, 1]} : vector<8x128xf32> to vector<1x32xf32>
    %13 = vector.extract_strided_slice %5 {offsets = [2, 32], sizes = [1, 32], strides = [1, 1]} : vector<8x128xf32> to vector<1x32xf32>
    %c136 = arith.constant 136 : index
    %c0_8 = arith.constant 0 : index
    %14 = vector.load %arg1[%c136, %c0_8] : memref<152x128xf32, #tpu.memory_space<vmem>>, vector<16x16xf32>
    %cst = arith.constant dense<0.000000e+00> : vector<16xf32>
    %15 = vector.multi_reduction <add>, %0, %cst [1] : vector<16x32xf32> to vector<16xf32>
    %16 = vector.shape_cast %15 : vector<16xf32> to vector<16x1xf32>
    %cst_9 = arith.constant 3.200000e+01 : f32
    %17 = vector.broadcast %cst_9 : f32 to vector<16x1xf32>
    %18 = arith.divf %16, %17 : vector<16x1xf32>
    %19 = arith.mulf %0, %0 : vector<16x32xf32>
    %cst_10 = arith.constant dense<0.000000e+00> : vector<16xf32>
    %20 = vector.multi_reduction <add>, %19, %cst_10 [1] : vector<16x32xf32> to vector<16xf32>
    %21 = vector.shape_cast %20 : vector<16xf32> to vector<16x1xf32>
    %cst_11 = arith.constant 3.200000e+01 : f32
    %22 = vector.broadcast %cst_11 : f32 to vector<16x1xf32>
    %23 = arith.divf %21, %22 : vector<16x1xf32>
    %24 = arith.mulf %18, %18 : vector<16x1xf32>
    %25 = arith.subf %23, %24 : vector<16x1xf32>
    %26 = vector.broadcast %18 : vector<16x1xf32> to vector<16x32xf32>
    %27 = arith.subf %0, %26 : vector<16x32xf32>
    %cst_12 = arith.constant 9.99999974E-6 : f32
    %28 = vector.broadcast %cst_12 : f32 to vector<16x1xf32>
    %29 = arith.addf %25, %28 : vector<16x1xf32>
    %30 = math.rsqrt %29 : vector<16x1xf32>
    %31 = vector.broadcast %30 : vector<16x1xf32> to vector<16x32xf32>
    %32 = arith.mulf %27, %31 : vector<16x32xf32>
    %33 = vector.broadcast %10 : vector<1x32xf32> to vector<16x32xf32>
    %34 = arith.mulf %32, %33 : vector<16x32xf32>
    %35 = vector.broadcast %11 : vector<1x32xf32> to vector<16x32xf32>
    %36 = arith.addf %34, %35 : vector<16x32xf32>
    %cst_13 = arith.constant dense<0.000000e+00> : vector<16x64xf32>
    %37 = tpu.matmul %36, %2, %cst_13 {dimension_numbers = #tpu.dot_dimension_numbers<[1], [0], [0], [1], [0, 0, 1, 1], [], []>} : vector<16x32xf32>, vector<32x64xf32>, vector<16x64xf32> -> vector<16x64xf32>
    %38 = vector.broadcast %6 : vector<1x64xf32> to vector<16x64xf32>
    %39 = arith.addf %37, %38 : vector<16x64xf32>
    %cst_14 = arith.constant dense<0.000000e+00> : vector<16x128xf32>
    %40 = tpu.matmul %36, %1, %cst_14 {dimension_numbers = #tpu.dot_dimension_numbers<[1], [0], [0], [1], [0, 0, 1, 1], [], []>} : vector<16x32xf32>, vector<32x128xf32>, vector<16x128xf32> -> vector<16x128xf32>
    %41 = vector.extract_strided_slice %39 {offsets = [0, 0], sizes = [16, 8], strides = [1, 1]} : vector<16x64xf32> to vector<16x8xf32>
    %42 = vector.extract_strided_slice %39 {offsets = [0, 32], sizes = [16, 8], strides = [1, 1]} : vector<16x64xf32> to vector<16x8xf32>
    %cst_15 = arith.constant dense<0.000000e+00> : vector<16x16xf32>
    %43 = tpu.matmul %41, %42, %cst_15 {dimension_numbers = #tpu.dot_dimension_numbers<[1], [1], [0], [0], [0, 0, 1, 0], [], []>} : vector<16x8xf32>, vector<16x8xf32>, vector<16x16xf32> -> vector<16x16xf32>
    %44 = arith.addf %43, %14 : vector<16x16xf32>
    %cst_16 = arith.constant dense<0xFF800000> : vector<16xf32>
    %45 = vector.multi_reduction <maximumf>, %44, %cst_16 [1] : vector<16x16xf32> to vector<16xf32>
    %46 = vector.shape_cast %45 : vector<16xf32> to vector<16x1xf32>
    %47 = vector.broadcast %46 : vector<16x1xf32> to vector<16x16xf32>
    %48 = arith.subf %44, %47 : vector<16x16xf32>
    %49 = math.exp %48 : vector<16x16xf32>
    %cst_17 = arith.constant dense<0.000000e+00> : vector<16xf32>
    %50 = vector.multi_reduction <add>, %49, %cst_17 [1] : vector<16x16xf32> to vector<16xf32>
    %51 = vector.shape_cast %50 : vector<16xf32> to vector<16x1xf32>
    %52 = tpu.reciprocal %51 {approx = true} : vector<16x1xf32> -> vector<16x1xf32>
    %53 = arith.mulf %51, %52 : vector<16x1xf32>
    %cst_18 = arith.constant 2.000000e+00 : f32
    %54 = vector.broadcast %cst_18 : f32 to vector<16x1xf32>
    %55 = arith.subf %54, %53 : vector<16x1xf32>
    %56 = arith.mulf %52, %55 : vector<16x1xf32>
    %57 = vector.extract_strided_slice %40 {offsets = [0, 0], sizes = [16, 32], strides = [1, 1]} : vector<16x128xf32> to vector<16x32xf32>
    %cst_19 = arith.constant dense<0.000000e+00> : vector<16x32xf32>
    %58 = tpu.matmul %49, %57, %cst_19 {dimension_numbers = #tpu.dot_dimension_numbers<[1], [0], [0], [1], [0, 0, 1, 1], [], []>} : vector<16x16xf32>, vector<16x32xf32>, vector<16x32xf32> -> vector<16x32xf32>
    %59 = vector.broadcast %56 : vector<16x1xf32> to vector<16x32xf32>
    %60 = arith.mulf %58, %59 : vector<16x32xf32>
    %61 = vector.extract_strided_slice %39 {offsets = [0, 8], sizes = [16, 8], strides = [1, 1]} : vector<16x64xf32> to vector<16x8xf32>
    %62 = vector.extract_strided_slice %39 {offsets = [0, 40], sizes = [16, 8], strides = [1, 1]} : vector<16x64xf32> to vector<16x8xf32>
    %cst_20 = arith.constant dense<0.000000e+00> : vector<16x16xf32>
    %63 = tpu.matmul %61, %62, %cst_20 {dimension_numbers = #tpu.dot_dimension_numbers<[1], [1], [0], [0], [0, 0, 1, 0], [], []>} : vector<16x8xf32>, vector<16x8xf32>, vector<16x16xf32> -> vector<16x16xf32>
    %64 = arith.addf %63, %14 : vector<16x16xf32>
    %cst_21 = arith.constant dense<0xFF800000> : vector<16xf32>
    %65 = vector.multi_reduction <maximumf>, %64, %cst_21 [1] : vector<16x16xf32> to vector<16xf32>
    %66 = vector.shape_cast %65 : vector<16xf32> to vector<16x1xf32>
    %67 = vector.broadcast %66 : vector<16x1xf32> to vector<16x16xf32>
    %68 = arith.subf %64, %67 : vector<16x16xf32>
    %69 = math.exp %68 : vector<16x16xf32>
    %cst_22 = arith.constant dense<0.000000e+00> : vector<16xf32>
    %70 = vector.multi_reduction <add>, %69, %cst_22 [1] : vector<16x16xf32> to vector<16xf32>
    %71 = vector.shape_cast %70 : vector<16xf32> to vector<16x1xf32>
    %72 = tpu.reciprocal %71 {approx = true} : vector<16x1xf32> -> vector<16x1xf32>
    %73 = arith.mulf %71, %72 : vector<16x1xf32>
    %cst_23 = arith.constant 2.000000e+00 : f32
    %74 = vector.broadcast %cst_23 : f32 to vector<16x1xf32>
    %75 = arith.subf %74, %73 : vector<16x1xf32>
    %76 = arith.mulf %72, %75 : vector<16x1xf32>
    %77 = vector.extract_strided_slice %40 {offsets = [0, 32], sizes = [16, 32], strides = [1, 1]} : vector<16x128xf32> to vector<16x32xf32>
    %cst_24 = arith.constant dense<0.000000e+00> : vector<16x32xf32>
    %78 = tpu.matmul %69, %77, %cst_24 {dimension_numbers = #tpu.dot_dimension_numbers<[1], [0], [0], [1], [0, 0, 1, 1], [], []>} : vector<16x16xf32>, vector<16x32xf32>, vector<16x32xf32> -> vector<16x32xf32>
    %79 = vector.broadcast %76 : vector<16x1xf32> to vector<16x32xf32>
    %80 = arith.mulf %78, %79 : vector<16x32xf32>
    %81 = vector.extract_strided_slice %39 {offsets = [0, 16], sizes = [16, 8], strides = [1, 1]} : vector<16x64xf32> to vector<16x8xf32>
    %82 = vector.extract_strided_slice %39 {offsets = [0, 48], sizes = [16, 8], strides = [1, 1]} : vector<16x64xf32> to vector<16x8xf32>
    %cst_25 = arith.constant dense<0.000000e+00> : vector<16x16xf32>
    %83 = tpu.matmul %81, %82, %cst_25 {dimension_numbers = #tpu.dot_dimension_numbers<[1], [1], [0], [0], [0, 0, 1, 0], [], []>} : vector<16x8xf32>, vector<16x8xf32>, vector<16x16xf32> -> vector<16x16xf32>
    %84 = arith.addf %83, %14 : vector<16x16xf32>
    %cst_26 = arith.constant dense<0xFF800000> : vector<16xf32>
    %85 = vector.multi_reduction <maximumf>, %84, %cst_26 [1] : vector<16x16xf32> to vector<16xf32>
    %86 = vector.shape_cast %85 : vector<16xf32> to vector<16x1xf32>
    %87 = vector.broadcast %86 : vector<16x1xf32> to vector<16x16xf32>
    %88 = arith.subf %84, %87 : vector<16x16xf32>
    %89 = math.exp %88 : vector<16x16xf32>
    %cst_27 = arith.constant dense<0.000000e+00> : vector<16xf32>
    %90 = vector.multi_reduction <add>, %89, %cst_27 [1] : vector<16x16xf32> to vector<16xf32>
    %91 = vector.shape_cast %90 : vector<16xf32> to vector<16x1xf32>
    %92 = tpu.reciprocal %91 {approx = true} : vector<16x1xf32> -> vector<16x1xf32>
    %93 = arith.mulf %91, %92 : vector<16x1xf32>
    %cst_28 = arith.constant 2.000000e+00 : f32
    %94 = vector.broadcast %cst_28 : f32 to vector<16x1xf32>
    %95 = arith.subf %94, %93 : vector<16x1xf32>
    %96 = arith.mulf %92, %95 : vector<16x1xf32>
    %97 = vector.extract_strided_slice %40 {offsets = [0, 64], sizes = [16, 32], strides = [1, 1]} : vector<16x128xf32> to vector<16x32xf32>
    %cst_29 = arith.constant dense<0.000000e+00> : vector<16x32xf32>
    %98 = tpu.matmul %89, %97, %cst_29 {dimension_numbers = #tpu.dot_dimension_numbers<[1], [0], [0], [1], [0, 0, 1, 1], [], []>} : vector<16x16xf32>, vector<16x32xf32>, vector<16x32xf32> -> vector<16x32xf32>
    %99 = vector.broadcast %96 : vector<16x1xf32> to vector<16x32xf32>
    %100 = arith.mulf %98, %99 : vector<16x32xf32>
    %101 = vector.extract_strided_slice %39 {offsets = [0, 24], sizes = [16, 8], strides = [1, 1]} : vector<16x64xf32> to vector<16x8xf32>
    %102 = vector.extract_strided_slice %39 {offsets = [0, 56], sizes = [16, 8], strides = [1, 1]} : vector<16x64xf32> to vector<16x8xf32>
    %cst_30 = arith.constant dense<0.000000e+00> : vector<16x16xf32>
    %103 = tpu.matmul %101, %102, %cst_30 {dimension_numbers = #tpu.dot_dimension_numbers<[1], [1], [0], [0], [0, 0, 1, 0], [], []>} : vector<16x8xf32>, vector<16x8xf32>, vector<16x16xf32> -> vector<16x16xf32>
    %104 = arith.addf %103, %14 : vector<16x16xf32>
    %cst_31 = arith.constant dense<0xFF800000> : vector<16xf32>
    %105 = vector.multi_reduction <maximumf>, %104, %cst_31 [1] : vector<16x16xf32> to vector<16xf32>
    %106 = vector.shape_cast %105 : vector<16xf32> to vector<16x1xf32>
    %107 = vector.broadcast %106 : vector<16x1xf32> to vector<16x16xf32>
    %108 = arith.subf %104, %107 : vector<16x16xf32>
    %109 = math.exp %108 : vector<16x16xf32>
    %cst_32 = arith.constant dense<0.000000e+00> : vector<16xf32>
    %110 = vector.multi_reduction <add>, %109, %cst_32 [1] : vector<16x16xf32> to vector<16xf32>
    %111 = vector.shape_cast %110 : vector<16xf32> to vector<16x1xf32>
    %112 = tpu.reciprocal %111 {approx = true} : vector<16x1xf32> -> vector<16x1xf32>
    %113 = arith.mulf %111, %112 : vector<16x1xf32>
    %cst_33 = arith.constant 2.000000e+00 : f32
    %114 = vector.broadcast %cst_33 : f32 to vector<16x1xf32>
    %115 = arith.subf %114, %113 : vector<16x1xf32>
    %116 = arith.mulf %112, %115 : vector<16x1xf32>
    %117 = vector.extract_strided_slice %40 {offsets = [0, 96], sizes = [16, 32], strides = [1, 1]} : vector<16x128xf32> to vector<16x32xf32>
    %cst_34 = arith.constant dense<0.000000e+00> : vector<16x32xf32>
    %118 = tpu.matmul %109, %117, %cst_34 {dimension_numbers = #tpu.dot_dimension_numbers<[1], [0], [0], [1], [0, 0, 1, 1], [], []>} : vector<16x16xf32>, vector<16x32xf32>, vector<16x32xf32> -> vector<16x32xf32>
    %119 = vector.broadcast %116 : vector<16x1xf32> to vector<16x32xf32>
    %120 = arith.mulf %118, %119 : vector<16x32xf32>
    %121 = arith.addf %60, %80 : vector<16x32xf32>
    %122 = arith.addf %100, %120 : vector<16x32xf32>
    %123 = arith.addf %121, %122 : vector<16x32xf32>
    %124 = vector.broadcast %8 : vector<1x32xf32> to vector<16x32xf32>
    %125 = arith.addf %123, %124 : vector<16x32xf32>
    %126 = arith.addf %0, %125 : vector<16x32xf32>
    %cst_35 = arith.constant dense<0.000000e+00> : vector<16xf32>
    %127 = vector.multi_reduction <add>, %126, %cst_35 [1] : vector<16x32xf32> to vector<16xf32>
    %128 = vector.shape_cast %127 : vector<16xf32> to vector<16x1xf32>
    %cst_36 = arith.constant 3.200000e+01 : f32
    %129 = vector.broadcast %cst_36 : f32 to vector<16x1xf32>
    %130 = arith.divf %128, %129 : vector<16x1xf32>
    %131 = arith.mulf %126, %126 : vector<16x32xf32>
    %cst_37 = arith.constant dense<0.000000e+00> : vector<16xf32>
    %132 = vector.multi_reduction <add>, %131, %cst_37 [1] : vector<16x32xf32> to vector<16xf32>
    %133 = vector.shape_cast %132 : vector<16xf32> to vector<16x1xf32>
    %cst_38 = arith.constant 3.200000e+01 : f32
    %134 = vector.broadcast %cst_38 : f32 to vector<16x1xf32>
    %135 = arith.divf %133, %134 : vector<16x1xf32>
    %136 = arith.mulf %130, %130 : vector<16x1xf32>
    %137 = arith.subf %135, %136 : vector<16x1xf32>
    %138 = vector.broadcast %130 : vector<16x1xf32> to vector<16x32xf32>
    %139 = arith.subf %126, %138 : vector<16x32xf32>
    %cst_39 = arith.constant 9.99999974E-6 : f32
    %140 = vector.broadcast %cst_39 : f32 to vector<16x1xf32>
    %141 = arith.addf %137, %140 : vector<16x1xf32>
    %142 = math.rsqrt %141 : vector<16x1xf32>
    %143 = vector.broadcast %142 : vector<16x1xf32> to vector<16x32xf32>
    %144 = arith.mulf %139, %143 : vector<16x32xf32>
    %145 = vector.broadcast %10 : vector<1x32xf32> to vector<16x32xf32>
    %146 = arith.mulf %144, %145 : vector<16x32xf32>
    %147 = vector.broadcast %11 : vector<1x32xf32> to vector<16x32xf32>
    %148 = arith.addf %146, %147 : vector<16x32xf32>
    %cst_40 = arith.constant dense<0.000000e+00> : vector<16x64xf32>
    %149 = tpu.matmul %148, %3, %cst_40 {dimension_numbers = #tpu.dot_dimension_numbers<[1], [0], [0], [1], [0, 0, 1, 1], [], []>} : vector<16x32xf32>, vector<32x64xf32>, vector<16x64xf32> -> vector<16x64xf32>
    %150 = vector.broadcast %7 : vector<1x64xf32> to vector<16x64xf32>
    %151 = arith.addf %149, %150 : vector<16x64xf32>
    %cst_41 = arith.constant 0.000000e+00 : f32
    %152 = vector.broadcast %cst_41 : f32 to vector<16x64xf32>
    %153 = arith.maximumf %151, %152 : vector<16x64xf32>
    %cst_42 = arith.constant dense<0.000000e+00> : vector<16x32xf32>
    %154 = tpu.matmul %153, %4, %cst_42 {dimension_numbers = #tpu.dot_dimension_numbers<[1], [0], [0], [1], [0, 0, 1, 1], [], []>} : vector<16x64xf32>, vector<64x32xf32>, vector<16x32xf32> -> vector<16x32xf32>
    %155 = vector.broadcast %9 : vector<1x32xf32> to vector<16x32xf32>
    %156 = arith.addf %154, %155 : vector<16x32xf32>
    %157 = arith.addf %148, %156 : vector<16x32xf32>
    %cst_43 = arith.constant dense<0.000000e+00> : vector<16xf32>
    %158 = vector.multi_reduction <add>, %157, %cst_43 [1] : vector<16x32xf32> to vector<16xf32>
    %159 = vector.shape_cast %158 : vector<16xf32> to vector<16x1xf32>
    %cst_44 = arith.constant 3.200000e+01 : f32
    %160 = vector.broadcast %cst_44 : f32 to vector<16x1xf32>
    %161 = arith.divf %159, %160 : vector<16x1xf32>
    %162 = arith.mulf %157, %157 : vector<16x32xf32>
    %cst_45 = arith.constant dense<0.000000e+00> : vector<16xf32>
    %163 = vector.multi_reduction <add>, %162, %cst_45 [1] : vector<16x32xf32> to vector<16xf32>
    %164 = vector.shape_cast %163 : vector<16xf32> to vector<16x1xf32>
    %cst_46 = arith.constant 3.200000e+01 : f32
    %165 = vector.broadcast %cst_46 : f32 to vector<16x1xf32>
    %166 = arith.divf %164, %165 : vector<16x1xf32>
    %167 = arith.mulf %161, %161 : vector<16x1xf32>
    %168 = arith.subf %166, %167 : vector<16x1xf32>
    %169 = vector.broadcast %161 : vector<16x1xf32> to vector<16x32xf32>
    %170 = arith.subf %157, %169 : vector<16x32xf32>
    %cst_47 = arith.constant 9.99999974E-6 : f32
    %171 = vector.broadcast %cst_47 : f32 to vector<16x1xf32>
    %172 = arith.addf %168, %171 : vector<16x1xf32>
    %173 = math.rsqrt %172 : vector<16x1xf32>
    %174 = vector.broadcast %173 : vector<16x1xf32> to vector<16x32xf32>
    %175 = arith.mulf %170, %174 : vector<16x32xf32>
    %176 = vector.broadcast %12 : vector<1x32xf32> to vector<16x32xf32>
    %177 = arith.mulf %175, %176 : vector<16x32xf32>
    %178 = vector.broadcast %13 : vector<1x32xf32> to vector<16x32xf32>
    %179 = arith.addf %177, %178 : vector<16x32xf32>
    %c0_48 = arith.constant 0 : index
    %c0_49 = arith.constant 0 : index
    %180 = vector.load %arg2[%c0_48, %c0_49] : memref<16x32xf32, #tpu.memory_space<vmem>>, vector<16x32xf32>
    tpu.vector_store %arg2[%c0_48, %c0_49], %179 {strides = array<i32>} : memref<16x32xf32, #tpu.memory_space<vmem>>, vector<16x32xf32>,
    return
  }
}

</mosaic_0001>

<bundles_post_ra>
// kernel: tpu_custom_call.1
= control target key start
LH: loop header
LB: loop body
LE: loop exit
PB: predicated region body
PF: predicated region fallthrough
CT: control target
= control target key end

     0   :  { %7 = vsyncpa [#allocation3], 0  ;;  %s1233_s0 = inlined_call_operand.hbm [shape: f32[16,32], index: 0, kind: input, shape index: {}]   ;;  %s1234_s1 = inlined_call_operand.hbm [shape: f32[152,128], index: 1, kind: input, shape index: {}]   ;;  %s1235_s2 = inlined_call_operand.hbm [shape: f32[16,32], index: 2, kind: output, shape index: {}]  }
   0x1   :  { %8 = vsyncpa [#allocation6], 0 }
   0x2   :  { %9 = vsyncpa [#allocation4], 0  ;;  %s14_s11 = sshll.u32 %s1233_s0, 4  ;;  %s1013_s12 = smov [#allocation2]   ;;  %s15_s11 = int_to_ptr.hbm [resolvable:$true] %s14_s11 }
   0x3   :  { %s16_s13 = sshll.u32 %s1013_s12, 4  ;;  %s27_s16 = sshll.u32 %s1234_s1, 4  ;;  %s17_s13 = int_to_ptr.vmem [resolvable:$true] %s16_s13  ;;  %s28_s16 = int_to_ptr.hbm [resolvable:$true] %s27_s16 }
   0x4   :  { %s1014_s17 = smov 128   ;;  %s1015_s18 = smov 8  }
   0x5   :  { %22 = dma.hbm_to_vmem [thread:$0]  %s15_s11, 256, %s17_s13, [#allocation3], %s1014_s17, %s1014_s17, %s1015_s18  }
   0x6   :  { %s1016_s19 = smov [#allocation5]  }
   0x7   :  { %s29_s20 = sshll.u32 %s1016_s19, 4  ;;  %s30_s20 = int_to_ptr.vmem [resolvable:$true] %s29_s20 }
   0x8   :  { %35 = dma.hbm_to_vmem [thread:$0]  %s28_s16, 2432, %s30_s20, [#allocation6], %s1014_s17, %s1014_s17, %s1015_s18  }
   0x9   :  { %1007 = dma.done.wait [#allocation3], 256  }
   0xa   :  { %1008 = vsyncadd [#allocation3], 4294967040 }
   0xb   :  { %1009 = dma.done.wait [#allocation6], 2432  }
   0xc   :  { %1010 = vsyncadd [#allocation6], 4294964864  ;;  %vm65_vm0 = vcmask 261120   ;;  %v1055_v0 = vld [vmem:[#allocation2 + $0x8] sm:$0xff]  ;;  %v1057_v1 = vld [vmem:[#allocation2] sm:$0xff]  ;;  %s1017_s0 = smov 64  }
   0xd   :  { %v1059_v2 = vld [vmem:[#allocation5 + $0x80] sm:$0xff]  ;;  %v69_v3 = vsel %vm65_vm0, %v1055_v0, 0.0  ;;  %v66_v4 = vsel %vm65_vm0, %v1057_v1, 0.0  ;;  %v82_v6 = vmul.f32 %v1055_v0, %v1055_v0  ;;  %v81_v7 = vmul.f32 %v1057_v1, %v1057_v1  ;;  %s1018_s1 = smov 32   ;;  %v1078_v18 = vld [vmem:[#allocation5 + $0x38] sm:$0xff]  ;;  %v1083_v21 = vld [vmem:[#allocation5 + $0x30] sm:$0xff] }
   0xe   :  { %70 = vadd.xlane.f32.xlu1 %v69_v3  ;;  %67 = vadd.xlane.f32.xlu0 %v66_v4  ;;  %v1066_v5 = vperm.slane %v1059_v2, 1  ;;  %v1019_v10 = vmov 32.0   ;;  %v49_v19 = vld [vmem:[#allocation5 + $0x18] sm:$0xff]  ;;  %v48_v22 = vld [vmem:[#allocation5 + $0x10] sm:$0xff]  ;;  %v879_v24 = vpack.i.bf16 %v1083_v21, %v1078_v18  ;;  %v1089_v25 = vld [vmem:[#allocation5 + $0x28] sm:$0xff]  ;;  %v1115_v4 = vperm.slane %v1059_v2, 0 }
   0xf   :  { %v86_v8 = vsel %vm65_vm0, %v82_v6, 0.0  ;;  %v83_v9 = vsel %vm65_vm0, %v81_v7, 0.0  ;;  %889 = vrcp.f32 %v1019_v10  ;;  %152 = vmatpush.msra.mxu0 %v1078_v18  ;;  %175 = vmatpush.msra.mxu1 %v49_v19  ;;  %v47_v26 = vld [vmem:[#allocation5 + $0x8] sm:$0xff]  ;;  %v1091_v27 = vld [vmem:[#allocation5 + $0x20] sm:$0xff]  ;;  %s1020_s21 = smov 96   ;;  %s1021_s22 = smov 88  }
  0x10   :  { %123 = vrot.lane.b32.xlu2 %v1066_v5, %s1017_s0  ;;  %v884_v29 = vpack.i.bf16 %v1091_v27, %v1089_v25  ;;  %v46_v30 = vld [vmem:[#allocation5] sm:$0xff]  ;;  %s1022_s23 = smov 120   ;;  %s1023_s24 = smov 80   ;;  %vm192_vm8 = vcmask 64512   ;;  %vm224_vm9 = vcmask 130048  }
  0x11   :  { %153 = vmatpush.msra.mxu0 %v1083_v21  ;;  %176 = vmatpush.msra.mxu1 %v48_v22  ;;  %s1024_s25 = smov 72   ;;  %s1025_s26 = smov 104  }
  0x12   :  { %s1026_s27 = smov 112   ;;  %s1027_s28 = smov [#allocation7]  }
  0x13   :  { %154 = vmatpush.msra.mxu0 %v1089_v25  ;;  %177 = vmatpush.msra.mxu1 %v47_v26  ;;  %s801_s29 = sshll.u32 %s1027_s28, 4  ;;  %s803_s4 = sshll.u32 %s1235_s2, 4  ;;  %s802_s29 = int_to_ptr.vmem [resolvable:$true] %s801_s29  ;;  %s804_s4 = int_to_ptr.hbm [resolvable:$true] %s803_s4 }
  0x15   :  { %v890_v11 = vpop.eup %889  ;;  %155 = vmatpush.msra.mxu0 %v1091_v27  ;;  %178 = vmatpush.msra.mxu1 %v46_v30 }
  0x16   :  { %87 = vadd.xlane.f32.xlu1 %v86_v8  ;;  %84 = vadd.xlane.f32.xlu0 %v83_v9  ;;  %v73_v12 = vmul.f32 32.0, %v890_v11  ;;  %vm77_vm1 = vweird.f32 %v890_v11 }
  0x18   :  { %128 = vrot.lane.b32.xlu2 %v1066_v5, %s1018_s1  ;;  %v74_v13 = vsub.f32 1.0, %v73_v12 }
  0x1a   :  { %v75_v14 = vmul.f32 %v890_v11, %v74_v13 }
  0x1c   :  { %v76_v15 = vadd.f32 %v890_v11, %v75_v14 }
  0x1e   :  { %v1081_v20 = vsel %vm77_vm1, %v890_v11, %v76_v15  ;;  %vm706_vm1 = vcmask 523264  }
  0x6a   :  { %v1100_v47 = vpop.permute.xlu2 %123 }
  0x72   :  { %v1103_v58 = vpop.permute.xlu2 %128 }
  0x81   :  { %v71_v16 = vpop.xlane.xlu1 %70  ;;  %v68_v17 = vpop.xlane.xlu0 %67 }
  0x82   :  { %v80_v23 = vmul.f32 %v1081_v20, %v71_v16  ;;  %v79_v28 = vmul.f32 %v1081_v20, %v68_v17 }
  0x84   :  { %v92_v31 = vmul.f32 %v80_v23, %v80_v23  ;;  %v91_v34 = vmul.f32 %v79_v28, %v79_v28  ;;  %v95_v54 = vsub.f32 %v1057_v1, %v79_v28  ;;  %v96_v59 = vsub.f32 %v1055_v0, %v80_v23 }
  0x89   :  { %v88_v32 = vpop.xlane.xlu1 %87  ;;  %v85_v33 = vpop.xlane.xlu0 %84 }
  0x8a   :  { %v90_v35 = vmul.f32 %v88_v32, %v1081_v20  ;;  %v89_v36 = vmul.f32 %v85_v33, %v1081_v20  ;;  %v63_v33 = vld [vmem:[#allocation5 + $0x88] sm:$0xff] }
  0x8c   :  { %v94_v37 = vsub.f32 %v90_v35, %v92_v31  ;;  %v93_v38 = vsub.f32 %v89_v36, %v91_v34 }
  0x8e   :  { %v98_v39 = vadd.f32 1e-05, %v94_v37  ;;  %v97_v40 = vadd.f32 1e-05, %v93_v38  ;;  %v64_v37 = vld [vmem:[#allocation5 + $0x90] sm:$0xff] }
  0x90   :  { %891 = vrsqrt.f32 %v98_v39  ;;  %vm105_vm4 = vweird.f32 %v97_v40  ;;  %vm115_vm6 = vweird.f32 %v98_v39 }
  0x91   :  { %893 = vrsqrt.f32 %v97_v40 }
  0x96   :  { %v892_v41 = vpop.eup %891 }
  0x97   :  { %v894_v42 = vpop.eup %893  ;;  %v110_v43 = vmul.f32 %v892_v41, %v98_v39  ;;  %vm116_vm3 = vweird.f32 %v892_v41 }
  0x98   :  { %v100_v44 = vmul.f32 %v894_v42, %v97_v40  ;;  %vm106_vm2 = vweird.f32 %v894_v42  ;;  %vm117_vm7 = vmor %vm115_vm6, %vm116_vm3 }
  0x99   :  { %v111_v45 = vmul.f32 %v892_v41, %v110_v43  ;;  %vm107_vm5 = vmor %vm105_vm4, %vm106_vm2 }
  0x9a   :  { %v101_v46 = vmul.f32 %v894_v42, %v100_v44 }
  0x9b   :  { %v112_v48 = vmul.f32 0.5, %v111_v45 }
  0x9c   :  { %v102_v49 = vmul.f32 0.5, %v101_v46 }
  0x9d   :  { %v113_v50 = vsub.f32 1.5, %v112_v48 }
  0x9e   :  { %v103_v51 = vsub.f32 1.5, %v102_v49 }
  0x9f   :  { %v114_v52 = vmul.f32 %v892_v41, %v113_v50 }
  0xa0   :  { %v104_v53 = vmul.f32 %v894_v42, %v103_v51 }
  0xa1   :  { %v118_v57 = vsel %vm117_vm7, %v892_v41, %v114_v52 }
  0xa2   :  { %v108_v55 = vsel %vm107_vm5, %v894_v42, %v104_v53  ;;  %v120_v61 = vmul.f32 %v118_v57, %v96_v59 }
  0xa3   :  { %v119_v56 = vmul.f32 %v108_v55, %v95_v54 }
  0xa4   :  { %v127_v63 = vmul.f32 %v1100_v47, %v120_v61 }
  0xa5   :  { %v126_v60 = vmul.f32 %v1100_v47, %v119_v56 }
  0xa6   :  { %v132_v3 = vadd.f32 %v1103_v58, %v127_v63 }
  0xa7   :  { %v131_v62 = vadd.f32 %v1103_v58, %v126_v60 }
  0xa9   :  { %817 = vmatmul.msk.f32.vlgmr.msra.gmra.mxu0 %vm65_vm0, %v131_v62  ;;  %819 = vmatmul.msk.f32.vlgmr.msra.gmra.mxu1 %vm65_vm0, %v131_v62 }
  0xb1   :  { %818 = vmatmul.msk.f32.gmra.mxu0 %vm65_vm0, %v132_v3  ;;  %820 = vmatmul.msk.f32.gmra.mxu1 %vm65_vm0, %v132_v3 }
 0x126   :  { %v157_v6 = vpop.f32.mrf.mxu0  ;;  %v180_v7 = vpop.f32.mrf.mxu1 }
 0x127   :  { %v158_v8 = vadd.f32 %v157_v6, %v1115_v4 }
 0x129   :  { %188 = vrot.lane.b32.xlu1 %v158_v8, %s1020_s21 }
 0x12e   :  { %v160_v9 = vpop.f32.mrf.mxu0  ;;  %v183_v10 = vpop.f32.mrf.mxu1 }
 0x12f   :  { %v161_v11 = vadd.f32 %v160_v9, %v1115_v4  ;;  %271 = vmatpush.msra.mxu3 %v183_v10  ;;  %v1123_v12 = vpack.i.bf16 %v180_v7, %v183_v10 }
 0x131   :  { %272 = vmatpush.msra.mxu3 %v180_v7  ;;  %190 = vrot.lane.b32.xlu0 %v161_v11, %s1020_s21 }
 0x132   :  { %286 = vrot.lane.b32.xlu1 %v158_v8, %s1021_s22 }
 0x13a   :  { %282 = vrot.lane.b32.xlu1 %v158_v8, %s1022_s23 }
 0x142   :  { %288 = vrot.lane.b32.xlu1 %v161_v11, %s1021_s22 }
 0x14a   :  { %392 = vrot.lane.b32.xlu1 %v161_v11, %s1023_s24 }
 0x152   :  { %494 = vrot.lane.b32.xlu1 %v161_v11, %s1024_s25 }
 0x15a   :  { %492 = vrot.lane.b32.xlu1 %v158_v8, %s1024_s25 }
 0x162   :  { %488 = vrot.lane.b32.xlu1 %v158_v8, %s1025_s26 }
 0x16a   :  { %490 = vrot.lane.b32.xlu1 %v161_v11, %s1025_s26 }
 0x172   :  { %865 = vrot.lane.b32.xlu1 %v1123_v12, %s1020_s21 }
 0x19b   :  { %v189_v13 = vpop.permute.xlu1 %188 }
 0x1a3   :  { %v191_v14 = vpop.permute.xlu0 %190 }
 0x1a4   :  { %v287_v15 = vpop.permute.xlu1 %286  ;;  %821 = vmatpush.xpose.msk.msra.mxu2 %vm192_vm8, %v191_v14 }
 0x1a8   :  { %822 = vmatpush.xpose.msk.msra.mxu2 %vm192_vm8, %v189_v13 }
 0x1ab   :  { %823 = vmatmul.msk.f32.vlgmr.msra.gmra.mxu2 %vm192_vm8, %v158_v8 }
 0x1ac   :  { %v283_v16 = vpop.permute.xlu1 %282 }
 0x1b3   :  { %824 = vmatmul.msk.f32.gmra.mxu2 %vm192_vm8, %v161_v11 }
 0x1b4   :  { %v289_v17 = vpop.permute.xlu1 %288 }
 0x1b5   :  { %827 = vmatpush.xpose.msk.msrb.mxu3 %vm192_vm8, %v289_v17 }
 0x1b9   :  { %828 = vmatpush.xpose.msk.msrb.mxu3 %vm192_vm8, %v287_v15 }
 0x1bc   :  { %v393_v19 = vpop.permute.xlu1 %392 }
 0x1bd   :  { %833 = vmatpush.xpose.msk.msrb.mxu1 %vm192_vm8, %v393_v19 }
 0x1c4   :  { %v495_v22 = vpop.permute.xlu1 %494 }
 0x1cc   :  { %v493_v23 = vpop.permute.xlu1 %492 }
 0x1d4   :  { %v489_v26 = vpop.permute.xlu1 %488 }
 0x1dc   :  { %v491_v28 = vpop.permute.xlu1 %490 }
 0x1e4   :  { %v866_v30 = vpop.permute.xlu1 %865 }
 0x1e5   :  { %v867_v31 = vunpack.i.l.bf16 %v866_v30  ;;  %v868_v32 = vunpack.i.h.bf16 %v866_v30 }
 0x1e7   :  { %375 = vmatpush.msrb.mxu0 %v867_v31 }
 0x1e9   :  { %376 = vmatpush.msrb.mxu0 %v868_v32 }
 0x22e   :  { %v218_v34 = vpop.f32.mrf.mxu2 }
 0x22f   :  { %v219_v35 = vadd.f32 %v218_v34, %v63_v33 }
 0x231   :  { %v225_v36 = vsel %vm224_vm9, %v219_v35, -inf }
 0x232   :  { %226 = vmax.xlane.f32.xlu2 %v225_v36 }
 0x236   :  { %v221_v38 = vpop.f32.mrf.mxu2 }
 0x237   :  { %v222_v39 = vadd.f32 %v221_v38, %v64_v37 }
 0x239   :  { %v228_v40 = vsel %vm224_vm9, %v222_v39, -inf }
 0x23a   :  { %229 = vmax.xlane.f32.xlu0 %v228_v40 }
 0x24a   :  { %284 = vrot.lane.b32.xlu2 %v161_v11, %s1022_s23 }
 0x24e   :  { %390 = vrot.lane.b32.xlu0 %v158_v8, %s1023_s24 }
 0x252   :  { %386 = vrot.lane.b32.xlu2 %v158_v8, %s1026_s27 }
 0x25a   :  { %388 = vrot.lane.b32.xlu2 %v161_v11, %s1026_s27 }
 0x2a5   :  { %v227_v41 = vpop.xlane.xlu2 %226 }
 0x2a6   :  { %v231_v42 = vsub.f32 %v219_v35, %v227_v41 }
 0x2a8   :  { %v233_v43 = vmul.f32 1.442695, %v231_v42 }
 0x2aa   :  { %895 = vpow2.f32 %v233_v43 }
 0x2ad   :  { %v230_v44 = vpop.xlane.xlu0 %229  ;;  %v285_v49 = vpop.permute.xlu2 %284 }
 0x2ae   :  { %v232_v45 = vsub.f32 %v222_v39, %v230_v44 }
 0x2b0   :  { %v896_v46 = vpop.eup %895  ;;  %v235_v48 = vmul.f32 1.442695, %v232_v45 }
 0x2b1   :  { %825 = vmatmul.msk.f32.vlgmr.msra.gmra.mxu3 %vm224_vm9, %v896_v46  ;;  %v237_v17 = vsel %vm224_vm9, %v896_v46, 0.0 }
 0x2b2   :  { %897 = vpow2.f32 %v235_v48  ;;  %839 = vmatpush.xpose.msk.msra.mxu3 %vm192_vm8, %v495_v22 }
 0x2b5   :  { %v387_v52 = vpop.permute.xlu2 %386 }
 0x2b6   :  { %840 = vmatpush.xpose.msk.msra.mxu3 %vm192_vm8, %v493_v23 }
 0x2b8   :  { %v898_v50 = vpop.eup %897 }
 0x2b9   :  { %826 = vmatmul.msk.f32.gmra.mxu3 %vm224_vm9, %v898_v50  ;;  %v240_v19 = vsel %vm224_vm9, %v898_v50, 0.0 }
 0x2bd   :  { %v389_v53 = vpop.permute.xlu2 %388 }
 0x2c0   :  { %v391_v51 = vpop.permute.xlu0 %390 }
 0x2c1   :  { %829 = vmatmul.msk.f32.vlgmr.msrb.gmra.mxu3 %vm192_vm8, %v283_v16  ;;  %834 = vmatpush.xpose.msk.msrb.mxu1 %vm192_vm8, %v391_v51 }
 0x2c4   :  { %835 = vmatmul.msk.f32.vlgmr.msrb.gmra.mxu1 %vm192_vm8, %v387_v52 }
 0x2c9   :  { %830 = vmatmul.msk.f32.gmra.mxu3 %vm192_vm8, %v285_v49 }
 0x2cc   :  { %836 = vmatmul.msk.f32.gmra.mxu1 %vm192_vm8, %v389_v53 }
 0x2d1   :  { %841 = vmatmul.msk.f32.vlgmr.msra.gmra.mxu3 %vm192_vm8, %v489_v26 }
 0x2d9   :  { %842 = vmatmul.msk.f32.gmra.mxu3 %vm192_vm8, %v491_v28 }
 0x334   :  { %v1149_v54 = vpop.f32.mrf.mxu3 }
 0x33c   :  { %v1151_v55 = vpop.f32.mrf.mxu3 }
 0x341   :  { %v419_v56 = vpop.f32.mrf.mxu1 }
 0x342   :  { %v420_v57 = vadd.f32 %v419_v56, %v63_v33 }
 0x344   :  { %v315_v59 = vpop.f32.mrf.mxu3  ;;  %v425_v60 = vsel %vm224_vm9, %v420_v57, -inf }
 0x345   :  { %v316_v61 = vadd.f32 %v315_v59, %v63_v33  ;;  %426 = vmax.xlane.f32.xlu1 %v425_v60 }
 0x347   :  { %v321_v62 = vsel %vm224_vm9, %v316_v61, -inf }
 0x348   :  { %322 = vmax.xlane.f32.xlu2 %v321_v62 }
 0x349   :  { %v422_v7 = vpop.f32.mrf.mxu1 }
 0x34a   :  { %v423_v8 = vadd.f32 %v422_v7, %v64_v37 }
 0x34c   :  { %v318_v63 = vpop.f32.mrf.mxu3  ;;  %v428_v11 = vsel %vm224_vm9, %v423_v8, -inf }
 0x34d   :  { %v319_v3 = vadd.f32 %v318_v63, %v64_v37 }
 0x34f   :  { %v324_v6 = vsel %vm224_vm9, %v319_v3, -inf }
 0x350   :  { %325 = vmax.xlane.f32.xlu0 %v324_v6 }
 0x354   :  { %v521_v9 = vpop.f32.mrf.mxu3 }
 0x355   :  { %v522_v10 = vadd.f32 %v521_v9, %v63_v33 }
 0x357   :  { %v527_v13 = vsel %vm224_vm9, %v522_v10, -inf }
 0x358   :  { %429 = vmax.xlane.f32.xlu0 %v428_v11  ;;  %528 = vmax.xlane.f32.xlu2 %v527_v13 }
 0x35c   :  { %v524_v14 = vpop.f32.mrf.mxu3 }
 0x35d   :  { %v525_v15 = vadd.f32 %v524_v14, %v64_v37 }
 0x35e   :  { %875 = vrot.lane.b32.xlu1 %v1123_v12, %s1018_s1 }
 0x35f   :  { %v530_v16 = vsel %vm224_vm9, %v525_v15, -inf }
 0x360   :  { %531 = vmax.xlane.f32.xlu0 %v530_v16 }
 0x368   :  { %238 = vadd.xlane.f32.xlu0 %v237_v17 }
 0x370   :  { %870 = vrot.lane.b32.xlu2 %v1123_v12, %s1017_s0  ;;  %241 = vadd.xlane.f32.xlu0 %v240_v19 }
 0x3b8   :  { %v427_v22 = vpop.xlane.xlu1 %426 }
 0x3b9   :  { %v431_v23 = vsub.f32 %v420_v57, %v427_v22 }
 0x3bb   :  { %v433_v26 = vmul.f32 1.442695, %v431_v23  ;;  %v323_v28 = vpop.xlane.xlu2 %322 }
 0x3bc   :  { %v327_v30 = vsub.f32 %v316_v61, %v323_v28 }
 0x3bd   :  { %899 = vpow2.f32 %v433_v26 }
 0x3be   :  { %v329_v31 = vmul.f32 1.442695, %v327_v30 }
 0x3c0   :  { %901 = vpow2.f32 %v329_v31 }
 0x3c3   :  { %v900_v32 = vpop.eup %899  ;;  %v326_v33 = vpop.xlane.xlu0 %325 }
 0x3c4   :  { %v328_v34 = vsub.f32 %v319_v3, %v326_v33  ;;  %v437_v35 = vsel %vm224_vm9, %v900_v32, 0.0 }
 0x3c5   :  { %438 = vadd.xlane.f32.xlu2 %v437_v35 }
 0x3c6   :  { %v902_v36 = vpop.eup %901  ;;  %v331_v37 = vmul.f32 1.442695, %v328_v34 }
 0x3c7   :  { %831 = vmatmul.msk.f32.vlgmr.msrb.gmra.mxu0 %vm224_vm9, %v902_v36  ;;  %v333_v12 = vsel %vm224_vm9, %v902_v36, 0.0 }
 0x3c8   :  { %903 = vpow2.f32 %v331_v37  ;;  %334 = vadd.xlane.f32.xlu0 %v333_v12 }
 0x3cb   :  { %v430_v38 = vpop.xlane.xlu0 %429  ;;  %v529_v39 = vpop.xlane.xlu2 %528 }
 0x3cc   :  { %v432_v40 = vsub.f32 %v423_v8, %v430_v38  ;;  %v533_v41 = vsub.f32 %v522_v10, %v529_v39 }
 0x3ce   :  { %v904_v42 = vpop.eup %903  ;;  %v435_v43 = vmul.f32 1.442695, %v432_v40  ;;  %v535_v44 = vmul.f32 1.442695, %v533_v41 }
 0x3cf   :  { %832 = vmatmul.msk.f32.gmra.mxu0 %vm224_vm9, %v904_v42  ;;  %v336_v45 = vsel %vm224_vm9, %v904_v42, 0.0 }
 0x3d0   :  { %905 = vpow2.f32 %v435_v43  ;;  %337 = vadd.xlane.f32.xlu1 %v336_v45  ;;  %v876_v46 = vpop.permute.xlu1 %875 }
 0x3d1   :  { %907 = vpow2.f32 %v535_v44  ;;  %v877_v48 = vunpack.i.l.bf16 %v876_v46  ;;  %v878_v49 = vunpack.i.h.bf16 %v876_v46 }
 0x3d3   :  { %v871_v50 = vpop.permute.xlu2 %870  ;;  %v532_v51 = vpop.xlane.xlu0 %531  ;;  %579 = vmatpush.msra.mxu0 %v877_v48 }
 0x3d4   :  { %v534_v52 = vsub.f32 %v525_v15, %v532_v51  ;;  %v872_v53 = vunpack.i.l.bf16 %v871_v50  ;;  %v873_v59 = vunpack.i.h.bf16 %v871_v50 }
 0x3d5   :  { %580 = vmatpush.msra.mxu0 %v878_v49 }
 0x3d6   :  { %v906_v56 = vpop.eup %905  ;;  %v537_v57 = vmul.f32 1.442695, %v534_v52  ;;  %477 = vmatpush.msrb.mxu2 %v872_v53 }
 0x3d7   :  { %v908_v60 = vpop.eup %907  ;;  %v440_v61 = vsel %vm224_vm9, %v906_v56, 0.0 }
 0x3d8   :  { %909 = vpow2.f32 %v537_v57  ;;  %843 = vmatmul.msk.f32.vlgmr.msra.gmra.mxu0 %vm224_vm9, %v908_v60  ;;  %478 = vmatpush.msrb.mxu2 %v873_v59  ;;  %v539_v63 = vsel %vm224_vm9, %v908_v60, 0.0 }
 0x3d9   :  { %441 = vadd.xlane.f32.xlu0 %v440_v61  ;;  %837 = vmatmul.msk.f32.vlgmr.msrb.gmra.mxu2 %vm224_vm9, %v900_v32 }
 0x3db   :  { %v239_v6 = vpop.xlane.xlu0 %238 }
 0x3de   :  { %v910_v62 = vpop.eup %909 }
 0x3df   :  { %v542_v3 = vsel %vm224_vm9, %v910_v62, 0.0 }
 0x3e0   :  { %844 = vmatmul.msk.f32.gmra.mxu0 %vm224_vm9, %v910_v62 }
 0x3e1   :  { %540 = vadd.xlane.f32.xlu0 %v539_v63  ;;  %838 = vmatmul.msk.f32.gmra.mxu2 %vm224_vm9, %v906_v56 }
 0x3e3   :  { %v242_v7 = vpop.xlane.xlu0 %241 }
 0x3e9   :  { %543 = vadd.xlane.f32.xlu0 %v542_v3  ;;  %885 = vrot.lane.b32.xlu1 %v884_v29, %s1017_s0 }
 0x438   :  { %v439_v10 = vpop.xlane.xlu2 %438 }
 0x43b   :  { %v335_v8 = vpop.xlane.xlu0 %334 }
 0x43c   :  { %911 = vrcp.f32 %v335_v8 }
 0x43d   :  { %913 = vrcp.f32 %v239_v6 }
 0x43e   :  { %915 = vrcp.f32 %v439_v10 }
 0x442   :  { %v912_v13 = vpop.eup %911 }
 0x443   :  { %v338_v14 = vpop.xlane.xlu1 %337  ;;  %v914_v15 = vpop.eup %913  ;;  %v341_v16 = vmul.f32 %v912_v13, %v335_v8 }
 0x444   :  { %v378_v9 = vpop.f32.mrf.mxu0  ;;  %917 = vrcp.f32 %v338_v14  ;;  %v916_v19 = vpop.eup %915  ;;  %v245_v22 = vmul.f32 %v914_v15, %v239_v6 }
 0x445   :  { %919 = vrcp.f32 %v242_v7  ;;  %v343_v27 = vsub.f32 2.0, %v341_v16  ;;  %v445_v29 = vmul.f32 %v916_v19, %v439_v10 }
 0x446   :  { %v247_v26 = vsub.f32 2.0, %v245_v22 }
 0x447   :  { %v345_v31 = vmul.f32 %v912_v13, %v343_v27  ;;  %v447_v32 = vsub.f32 2.0, %v445_v29 }
 0x448   :  { %v249_v37 = vmul.f32 %v914_v15, %v247_v26 }
 0x449   :  { %v384_v40 = vmul.f32 %v378_v9, %v345_v31  ;;  %v449_v45 = vmul.f32 %v916_v19, %v447_v32 }
 0x44a   :  { %v918_v23 = vpop.eup %917  ;;  %v280_v46 = vmul.f32 %v1149_v54, %v249_v37 }
 0x44b   :  { %v920_v28 = vpop.eup %919  ;;  %v342_v33 = vmul.f32 %v918_v23, %v338_v14 }
 0x44c   :  { %v442_v11 = vpop.xlane.xlu0 %441  ;;  %v381_v25 = vpop.f32.mrf.mxu0  ;;  %v246_v38 = vmul.f32 %v920_v28, %v242_v7  ;;  %v590_v52 = vadd.f32 %v384_v40, %v280_v46 }
 0x44d   :  { %v344_v42 = vsub.f32 2.0, %v342_v33 }
 0x44e   :  { %v248_v48 = vsub.f32 2.0, %v246_v38 }
 0x44f   :  { %v346_v56 = vmul.f32 %v918_v23, %v344_v42 }
 0x450   :  { %v250_v60 = vmul.f32 %v920_v28, %v248_v48 }
 0x451   :  { %v385_v3 = vmul.f32 %v381_v25, %v346_v56 }
 0x452   :  { %v281_v54 = vmul.f32 %v1151_v55, %v250_v60 }
 0x454   :  { %v541_v17 = vpop.xlane.xlu0 %540  ;;  %v591_v14 = vadd.f32 %v385_v3, %v281_v54 }
 0x455   :  { %921 = vrcp.f32 %v541_v17  ;;  %v582_v41 = vpop.f32.mrf.mxu0 }
 0x456   :  { %923 = vrcp.f32 %v442_v11 }
 0x45b   :  { %v922_v30 = vpop.eup %921  ;;  %v886_v56 = vpop.permute.xlu1 %885 }
 0x45c   :  { %v547_v34 = vmul.f32 %v922_v30, %v541_v17  ;;  %v544_v35 = vpop.xlane.xlu0 %543  ;;  %v924_v36 = vpop.eup %923 }
 0x45d   :  { %925 = vrcp.f32 %v544_v35  ;;  %v480_v12 = vpop.f32.mrf.mxu2  ;;  %v446_v43 = vmul.f32 %v924_v36, %v442_v11  ;;  %v585_v9 = vpop.f32.mrf.mxu0 }
 0x45e   :  { %v549_v39 = vsub.f32 2.0, %v547_v34  ;;  %v486_v50 = vmul.f32 %v480_v12, %v449_v45  ;;  %v59_v12 = vld [vmem:[#allocation5 + $0x68] sm:$0xff] }
 0x45f   :  { %v448_v53 = vsub.f32 2.0, %v446_v43  ;;  %v56_v43 = vld [vmem:[#allocation5 + $0x50] sm:$0xff] }
 0x460   :  { %v551_v44 = vmul.f32 %v922_v30, %v549_v39  ;;  %v58_v39 = vld [vmem:[#allocation5 + $0x60] sm:$0xff] }
 0x461   :  { %v450_v8 = vmul.f32 %v924_v36, %v448_v53 }
 0x462   :  { %v588_v49 = vmul.f32 %v582_v41, %v551_v44  ;;  %v57_v41 = vld [vmem:[#allocation5 + $0x58] sm:$0xff] }
 0x463   :  { %v926_v51 = vpop.eup %925 }
 0x464   :  { %v548_v57 = vmul.f32 %v926_v51, %v544_v35  ;;  %v592_v59 = vadd.f32 %v588_v49, %v486_v50  ;;  %v61_v35 = vld [vmem:[#allocation5 + $0x78] sm:$0xff] }
 0x465   :  { %v483_v63 = vpop.f32.mrf.mxu2  ;;  %721 = vmatpush.msra.mxu2 %v61_v35 }
 0x466   :  { %v550_v61 = vsub.f32 2.0, %v548_v57  ;;  %v594_v62 = vadd.f32 %v592_v59, %v590_v52  ;;  %v487_v11 = vmul.f32 %v483_v63, %v450_v8 }
 0x468   :  { %v596_v6 = vadd.f32 %v594_v62, %v1066_v5  ;;  %v552_v7 = vmul.f32 %v926_v51, %v550_v61  ;;  %v887_v62 = vunpack.i.l.bf16 %v886_v56 }
 0x46a   :  { %v589_v10 = vmul.f32 %v585_v9, %v552_v7  ;;  %v598_v13 = vadd.f32 %v596_v6, %v1057_v1  ;;  %v888_v7 = vunpack.i.h.bf16 %v886_v56 }
 0x46c   :  { %v593_v15 = vadd.f32 %v589_v10, %v487_v11  ;;  %v600_v16 = vsel %vm65_vm0, %v598_v13, 0.0  ;;  %v608_v17 = vmul.f32 %v598_v13, %v598_v13 }
 0x46d   :  { %601 = vadd.xlane.f32.xlu0 %v600_v16 }
 0x46e   :  { %v595_v19 = vadd.f32 %v593_v15, %v591_v14  ;;  %v610_v22 = vsel %vm65_vm0, %v608_v17, 0.0  ;;  %v54_v14 = vld [vmem:[#allocation5 + $0x40] sm:$0xff] }
 0x46f   :  { %611 = vadd.xlane.f32.xlu2 %v610_v22 }
 0x470   :  { %v597_v25 = vadd.f32 %v595_v19, %v1066_v5 }
 0x472   :  { %v1189_v27 = vadd.f32 %v597_v25, %v1055_v0 }
 0x474   :  { %v603_v55 = vsel %vm65_vm0, %v1189_v27, 0.0  ;;  %v609_v1 = vmul.f32 %v1189_v27, %v1189_v27 }
 0x475   :  { %604 = vadd.xlane.f32.xlu0 %v603_v55 }
 0x476   :  { %v613_v29 = vsel %vm65_vm0, %v609_v1, 0.0 }
 0x477   :  { %614 = vadd.xlane.f32.xlu2 %v613_v29 }
 0x489   :  { %880 = vrot.lane.b32.xlu0 %v879_v24, %s1017_s0 }
 0x48f   :  { %669 = vrot.lane.b32.xlu2 %v1115_v4, %s1017_s0 }
 0x491   :  { %703 = vrot.lane.b32.xlu0 %v1066_v5, %s1020_s21  ;;  %v60_v5 = vld [vmem:[#allocation5 + $0x70] sm:$0xff] }
 0x492   :  { %722 = vmatpush.msra.mxu2 %v60_v5 }
 0x494   :  { %723 = vmatpush.msra.mxu2 %v59_v12 }
 0x496   :  { %724 = vmatpush.msra.mxu2 %v58_v39 }
 0x498   :  { %725 = vmatpush.msra.mxu2 %v57_v41 }
 0x49a   :  { %726 = vmatpush.msra.mxu2 %v56_v43 }
 0x4e0   :  { %v602_v0 = vpop.xlane.xlu0 %601 }
 0x4e1   :  { %v606_v23 = vmul.f32 %v602_v0, %v1081_v20 }
 0x4e2   :  { %v612_v26 = vpop.xlane.xlu2 %611 }
 0x4e3   :  { %v618_v28 = vmul.f32 %v606_v23, %v606_v23  ;;  %v616_v30 = vmul.f32 %v612_v26, %v1081_v20  ;;  %v622_v49 = vsub.f32 %v598_v13, %v606_v23  ;;  %v55_v13 = vld [vmem:[#allocation5 + $0x48] sm:$0xff] }
 0x4e4   :  { %727 = vmatpush.msra.mxu2 %v55_v13 }
 0x4e5   :  { %v620_v31 = vsub.f32 %v616_v30, %v618_v28 }
 0x4e6   :  { %728 = vmatpush.msra.mxu2 %v54_v14 }
 0x4e7   :  { %v624_v32 = vadd.f32 1e-05, %v620_v31 }
 0x4e8   :  { %v605_v33 = vpop.xlane.xlu0 %604 }
 0x4e9   :  { %927 = vrsqrt.f32 %v624_v32  ;;  %v607_v18 = vmul.f32 %v605_v33, %v1081_v20  ;;  %vm632_vm11 = vweird.f32 %v624_v32 }
 0x4ea   :  { %v615_v21 = vpop.xlane.xlu2 %614 }
 0x4eb   :  { %v619_v24 = vmul.f32 %v607_v18, %v607_v18  ;;  %v617_v4 = vmul.f32 %v615_v21, %v1081_v20  ;;  %v623_v6 = vsub.f32 %v1189_v27, %v607_v18  ;;  %v786_v18 = vperm.slane %v1059_v2, 2 }
 0x4ed   :  { %v621_v34 = vsub.f32 %v617_v4, %v619_v24 }
 0x4ef   :  { %v928_v36 = vpop.eup %927  ;;  %v625_v37 = vadd.f32 1e-05, %v621_v34 }
 0x4f0   :  { %v627_v38 = vmul.f32 %v928_v36, %v624_v32  ;;  %vm633_vm10 = vweird.f32 %v928_v36 }
 0x4f1   :  { %929 = vrsqrt.f32 %v625_v37  ;;  %vm634_vm12 = vmor %vm632_vm11, %vm633_vm10  ;;  %vm642_vm14 = vweird.f32 %v625_v37 }
 0x4f2   :  { %v628_v40 = vmul.f32 %v928_v36, %v627_v38  ;;  %v670_v15 = vpop.permute.xlu2 %669 }
 0x4f4   :  { %v629_v42 = vmul.f32 0.5, %v628_v40 }
 0x4f6   :  { %v630_v44 = vsub.f32 1.5, %v629_v42 }
 0x4f7   :  { %v930_v45 = vpop.eup %929 }
 0x4f8   :  { %v631_v46 = vmul.f32 %v928_v36, %v630_v44  ;;  %v637_v48 = vmul.f32 %v930_v45, %v625_v37  ;;  %vm643_vm13 = vweird.f32 %v930_v45 }
 0x4f9   :  { %vm644_vm15 = vmor %vm642_vm14, %vm643_vm13 }
 0x4fa   :  { %v635_v50 = vsel %vm634_vm12, %v928_v36, %v631_v46  ;;  %v638_v51 = vmul.f32 %v930_v45, %v637_v48 }
 0x4fb   :  { %v646_v52 = vmul.f32 %v635_v50, %v622_v49  ;;  %v881_v53 = vpop.permute.xlu0 %880 }
 0x4fc   :  { %v639_v57 = vmul.f32 0.5, %v638_v51  ;;  %v882_v59 = vunpack.i.l.bf16 %v881_v53  ;;  %v883_v61 = vunpack.i.h.bf16 %v881_v53 }
 0x4fd   :  { %v648_v63 = vmul.f32 %v646_v52, %v1100_v47 }
 0x4fe   :  { %v640_v60 = vsub.f32 1.5, %v639_v57  ;;  %690 = vmatpush.msra.mxu1 %v882_v59 }
 0x4ff   :  { %v650_v9 = vadd.f32 %v648_v63, %v1103_v58 }
 0x500   :  { %v641_v3 = vmul.f32 %v930_v45, %v640_v60  ;;  %691 = vmatpush.msra.mxu1 %v883_v61 }
 0x502   :  { %692 = vmatpush.msra.mxu1 %v887_v62  ;;  %v645_v8 = vsel %vm644_vm15, %v930_v45, %v641_v3 }
 0x503   :  { %v647_v54 = vmul.f32 %v645_v8, %v623_v6  ;;  %v704_v55 = vpop.permute.xlu0 %703 }
 0x504   :  { %693 = vmatpush.msra.mxu1 %v888_v7 }
 0x505   :  { %845 = vmatmul.msk.f32.vlgmr.msra.gmra.mxu1 %vm65_vm0, %v650_v9  ;;  %v649_v10 = vmul.f32 %v647_v54, %v1100_v47 }
 0x507   :  { %v651_v11 = vadd.f32 %v649_v10, %v1103_v58 }
 0x50d   :  { %846 = vmatmul.msk.f32.gmra.mxu1 %vm65_vm0, %v651_v11 }
 0x582   :  { %v695_v16 = vpop.f32.mrf.mxu1 }
 0x583   :  { %v696_v17 = vadd.f32 %v695_v16, %v670_v15 }
 0x585   :  { %v701_v19 = vmax.f32 %v696_v17, 0.0 }
 0x587   :  { %847 = vmatmul.msk.f32.vlgmr.msra.gmra.mxu2 %vm706_vm1, %v701_v19 }
 0x58a   :  { %v698_v22 = vpop.f32.mrf.mxu1 }
 0x58b   :  { %v699_v25 = vadd.f32 %v698_v22, %v670_v15 }
 0x58d   :  { %v702_v27 = vmax.f32 %v699_v25, 0.0 }
 0x58f   :  { %848 = vmatmul.msk.f32.gmra.mxu2 %vm706_vm1, %v702_v27 }
 0x60a   :  { %v730_v47 = vpop.f32.mrf.mxu2 }
 0x60b   :  { %v731_v1 = vadd.f32 %v730_v47, %v704_v55 }
 0x60d   :  { %v736_v58 = vadd.f32 %v731_v1, %v650_v9 }
 0x60f   :  { %v738_v29 = vsel %vm65_vm0, %v736_v58, 0.0  ;;  %v746_v0 = vmul.f32 %v736_v58, %v736_v58 }
 0x610   :  { %739 = vadd.xlane.f32.xlu1 %v738_v29 }
 0x611   :  { %v748_v23 = vsel %vm65_vm0, %v746_v0, 0.0 }
 0x612   :  { %v733_v26 = vpop.f32.mrf.mxu2  ;;  %749 = vadd.xlane.f32.xlu2 %v748_v23 }
 0x613   :  { %v734_v28 = vadd.f32 %v733_v26, %v704_v55 }
 0x615   :  { %v737_v30 = vadd.f32 %v734_v28, %v651_v11 }
 0x617   :  { %v741_v31 = vsel %vm65_vm0, %v737_v30, 0.0  ;;  %v747_v32 = vmul.f32 %v737_v30, %v737_v30 }
 0x618   :  { %742 = vadd.xlane.f32.xlu0 %v741_v31 }
 0x619   :  { %v751_v33 = vsel %vm65_vm0, %v747_v32, 0.0 }
 0x61a   :  { %752 = vadd.xlane.f32.xlu1 %v751_v33 }
 0x62c   :  { %790 = vrot.lane.b32.xlu0 %v786_v18, %s1020_s21 }
 0x683   :  { %v740_v21 = vpop.xlane.xlu1 %739 }
 0x684   :  { %v744_v24 = vmul.f32 %v740_v21, %v1081_v20 }
 0x685   :  { %v750_v4 = vpop.xlane.xlu2 %749 }
 0x686   :  { %v756_v34 = vmul.f32 %v744_v24, %v744_v24  ;;  %v754_v35 = vmul.f32 %v750_v4, %v1081_v20  ;;  %v760_v51 = vsub.f32 %v736_v58, %v744_v24 }
 0x688   :  { %v758_v5 = vsub.f32 %v754_v35, %v756_v34 }
 0x68a   :  { %v762_v36 = vadd.f32 1e-05, %v758_v5 }
 0x68b   :  { %v743_v37 = vpop.xlane.xlu0 %742 }
 0x68c   :  { %931 = vrsqrt.f32 %v762_v36  ;;  %v745_v12 = vmul.f32 %v743_v37, %v1081_v20  ;;  %vm770_vm3 = vweird.f32 %v762_v36 }
 0x68d   :  { %v753_v38 = vpop.xlane.xlu1 %752 }
 0x68e   :  { %v757_v39 = vmul.f32 %v745_v12, %v745_v12  ;;  %v755_v40 = vmul.f32 %v753_v38, %v1081_v20  ;;  %v761_v63 = vsub.f32 %v737_v30, %v745_v12 }
 0x690   :  { %v759_v2 = vsub.f32 %v755_v40, %v757_v39 }
 0x692   :  { %v932_v41 = vpop.eup %931  ;;  %v763_v42 = vadd.f32 1e-05, %v759_v2 }
 0x693   :  { %v765_v43 = vmul.f32 %v932_v41, %v762_v36  ;;  %vm771_vm2 = vweird.f32 %v932_v41 }
 0x694   :  { %933 = vrsqrt.f32 %v763_v42  ;;  %vm772_vm4 = vmor %vm770_vm3, %vm771_vm2  ;;  %vm780_vm6 = vweird.f32 %v763_v42 }
 0x695   :  { %v766_v44 = vmul.f32 %v932_v41, %v765_v43 }
 0x697   :  { %v767_v45 = vmul.f32 0.5, %v766_v44 }
 0x699   :  { %v768_v46 = vsub.f32 1.5, %v767_v45 }
 0x69a   :  { %v934_v48 = vpop.eup %933 }
 0x69b   :  { %v775_v49 = vmul.f32 %v934_v48, %v763_v42  ;;  %v769_v50 = vmul.f32 %v932_v41, %v768_v46  ;;  %vm781_vm5 = vweird.f32 %v934_v48 }
 0x69c   :  { %vm782_vm7 = vmor %vm780_vm6, %vm781_vm5 }
 0x69d   :  { %v776_v52 = vmul.f32 %v934_v48, %v775_v49  ;;  %v773_v53 = vsel %vm772_vm4, %v932_v41, %v769_v50 }
 0x69e   :  { %v784_v56 = vmul.f32 %v773_v53, %v760_v51  ;;  %v791_v20 = vpop.permute.xlu0 %790 }
 0x69f   :  { %v777_v57 = vmul.f32 0.5, %v776_v52 }
 0x6a0   :  { %v787_v59 = vmul.f32 %v786_v18, %v784_v56 }
 0x6a1   :  { %v778_v60 = vsub.f32 1.5, %v777_v57 }
 0x6a2   :  { %v793_v61 = vadd.f32 %v791_v20, %v787_v59 }
 0x6a3   :  { %v779_v62 = vmul.f32 %v934_v48, %v778_v60 }
 0x6a4   :  { %795 = vst.msk [vmem:[#allocation7] sm:$0xff] %vm65_vm0, %v793_v61 }
 0x6a5   :  { %v783_v3 = vsel %vm782_vm7, %v934_v48, %v779_v62 }
 0x6a6   :  { %v785_v6 = vmul.f32 %v783_v3, %v761_v63 }
 0x6a8   :  { %v788_v7 = vmul.f32 %v786_v18, %v785_v6 }
 0x6aa   :  { %v794_v8 = vadd.f32 %v791_v20, %v788_v7 }
 0x6ac   :  { %796 = vst.msk [vmem:[#allocation7 + $0x8] sm:$0xff] %vm65_vm0, %v794_v8 }
 0x6ad   :  { %809 = dma.vmem_to_hbm [thread:$0]  %s802_s29, 256, %s804_s4, [#allocation4], %s1014_s17, %s1014_s17, %s1015_s18  }
 0x6ae   :  { %1011 = dma.done.wait [#allocation4], 256  }
 0x6af   :  { %1012 = vsyncadd [#allocation4], 4294967040 }
 0x6b0   :  { %814 = vsyncpa [#allocation3], 1 }
 0x6b1   :  { %815 = vsyncpa [#allocation6], 1 }
 0x6b2   :  { %816 = vsyncpa [#allocation4], 1 }

</bundles_post_ra>
